<compile_context>
chip_gen: v7x
topology: tpu7x:2x2x1
jax: 0.10.0
libtpu: 0.0.40
codegen_flags: <defaults>
</compile_context>

<pallas_src>
import functools

import jax
import jax.numpy as jnp
from jax.experimental import pallas as pl
from jax.experimental.pallas import tpu as pltpu

LN_EPS = 1e-5  # nn.LayerNorm default


def _cdiv(a, b):
    return (a + b - 1) // b


def _round_up(a, b):
    return _cdiv(a, b) * b


def _aggregate_kernel(x_ref, p_ref, out_ref, m_ref, l_ref, acc_ref, *,
                      seq_len, needs_mask):
    # x_ref:   (TB, TS, D) context block
    # p_ref:   (8, D) packed params: row 0 = gamma*w_fc, row 1 = beta*w_fc
    # out_ref: (TB, D) output block (resident across the seq axis)
    # m_ref/l_ref: (TB, 1, 1) online-softmax running max / denominator
    # acc_ref: (TB, 1, D) running weighted sum
    s_idx = pl.program_id(1)
    ts = x_ref.shape[1]
    d = x_ref.shape[2]
    inv_d = 1.0 / d

    @pl.when(s_idx == 0)
    def _():
        m_ref[...] = jnp.full(m_ref.shape, -jnp.inf, jnp.float32)
        l_ref[...] = jnp.zeros(l_ref.shape, jnp.float32)
        acc_ref[...] = jnp.zeros(acc_ref.shape, jnp.float32)

    # Folded LayerNorm + Linear(D->1):
    #   score = rsqrt(var+eps) * (sum_d(x*w') - mean*W) + c
    # with w' = gamma*w_fc, W = sum(w'), c = sum(beta*w_fc).
    pw = p_ref[...]
    wprime = pw[0:1, :].reshape(1, 1, d)                                   # (1,1,D)
    w_sum = jnp.sum(pw[0:1, :], axis=-1, keepdims=True).reshape(1, 1, 1)   # W
    c_bias = jnp.sum(pw[1:2, :], axis=-1, keepdims=True).reshape(1, 1, 1)  # c

    x = x_ref[...].astype(jnp.float32)                       # (TB,TS,D)
    sx = jnp.sum(x, axis=-1, keepdims=True)                  # (TB,TS,1) lane reduce
    sxx = jnp.sum(x * x, axis=-1, keepdims=True)
    swx = jnp.sum(x * wprime, axis=-1, keepdims=True)
    mean = sx * inv_d
    var = sxx * inv_d - mean * mean                          # one-pass variance
    scores = (swx - mean * w_sum) * jax.lax.rsqrt(var + LN_EPS) + c_bias

    # TODO(synk): nn.Dropout omitted (identity in eval mode).

    if needs_mask:
        pos = jax.lax.broadcasted_iota(jnp.int32, scores.shape, 1) + s_idx * ts
        scores = jnp.where(pos < seq_len, scores, -jnp.inf)

    # Online softmax over the sequence axis; attn stays (TB,TS,1) so the p*x
    # broadcast over D lanes is free (no XLU relayout, no MXU matvec).
    m_prev = m_ref[...]
    m_new = jnp.maximum(m_prev, jnp.max(scores, axis=1, keepdims=True))
    alpha = jnp.exp(m_prev - m_new)                          # (TB,1,1)
    p = jnp.exp(scores - m_new)                              # (TB,TS,1)
    l_ref[...] = alpha * l_ref[...] + jnp.sum(p, axis=1, keepdims=True)

    # Weighted sum with the pre-LayerNorm x; re-read x_ref so the big f32 copy is
    # not live across the whole softmax. Padded seq positions are zeroed so that
    # garbage in ragged edge blocks cannot leak into valid rows.
    xa = x_ref[...].astype(jnp.float32)
    if needs_mask:
        xa = jnp.where(pos < seq_len, xa, 0.0)
    acc_ref[...] = alpha * acc_ref[...] + jnp.sum(p * xa, axis=1, keepdims=True)
    m_ref[...] = m_new

    @pl.when(s_idx == pl.num_programs(1) - 1)
    def _():
        inv_l = 1.0 / l_ref[...]          # exact: only (TB,1,1) elements, ~free
        out_ref[...] = (acc_ref[...] * inv_l)[:, 0, :].astype(out_ref.dtype)


def _vmem_capacity_bytes():
    try:
        info = pltpu.get_tpu_info()
        cap = getattr(info, "vmem_capacity_bytes", None)
        if cap:
            return int(cap)
    except Exception:
        pass
    return 64 * 1024 * 1024  # conservative (v7x-sized) fallback


def _choose_tiles(B, S, D, vmem_bytes):
    # Generation-aware f32 tile budget: larger tiles on v5e/v6e (128 MiB physical
    # VMEM), smaller on v7x (64 MiB).
    if vmem_bytes >= 96 * 1024 * 1024:
        tile_budget = 6 * 1024 * 1024
    else:
        tile_budget = 4 * 1024 * 1024
    row_f32 = D * 4
    full_seq_bytes = S * row_f32

    if 8 * full_seq_bytes <= tile_budget:
        # Full sequence fits: tile the batch only.
        ts = S
        tb_cap = max(8, (tile_budget // full_seq_bytes) // 8 * 8)
        if B <= tb_cap:
            if B > 8:
                # Guarantee >= 2 batch grid steps so both v7x TensorCores get work.
                tb = max(8, _round_up(_cdiv(B, 2), 8))
            else:
                tb = B            # exact single block, no padded rows
        else:
            tb = tb_cap
    else:
        # Long sequences: tile the seq axis, rely on the online-softmax path.
        tb = 8
        ts = (tile_budget // (8 * row_f32)) // 8 * 8
        ts = max(8, min(ts, _round_up(S, 8)))
    return tb, ts


def aggregate_layer(context, w_fc, gamma, beta):
    """context: (B, S, D); w_fc, gamma, beta: (D,). Returns (B, D)."""
    B, S, D = context.shape
    w_fc = w_fc.astype(jnp.float32)
    gamma = gamma.astype(jnp.float32)
    beta = beta.astype(jnp.float32)

    # Pack the tiny parameters into one sublane-aligned (8, D) buffer:
    #   row 0 = gamma * w_fc (w'), row 1 = beta * w_fc (reduced to c in-kernel).
    params = jnp.zeros((8, D), jnp.float32)
    params = params.at[0].set(gamma * w_fc)
    params = params.at[1].set(beta * w_fc)

    itemsize = jnp.dtype(context.dtype).itemsize
    vmem_phys = _vmem_capacity_bytes()
    vmem_limit = int(min(vmem_phys * 3 // 4, 96 * 1024 * 1024))
    tb, ts = _choose_tiles(B, S, D, vmem_phys)
    nb = _cdiv(B, tb)
    ns = _cdiv(S, ts)
    needs_mask = (ns * ts) != S

    # Loud failure instead of blowing past the scoped-VMEM limit.
    est_vmem = tb * ts * D * (2 * itemsize + 8) + tb * D * 4 + 8 * D * 4
    if est_vmem > vmem_limit:
        raise ValueError(
            f"aggregate_layer: block (tb={tb}, ts={ts}, D={D}) needs ~{est_vmem} "
            f"bytes of VMEM which exceeds the limit {vmem_limit}.")

    cost = pl.CostEstimate(
        flops=int(8 * nb * tb * ns * ts * D),
        transcendentals=int(2 * nb * tb * ns * ts),
        bytes_accessed=int(nb * ns * tb * ts * D * itemsize
                           + nb * tb * D * itemsize
                           + nb * ns * 8 * D * 4),
    )

    kernel = functools.partial(_aggregate_kernel, seq_len=S, needs_mask=needs_mask)

    return pl.pallas_call(
        kernel,
        out_shape=jax.ShapeDtypeStruct((B, D), context.dtype),
        grid_spec=pltpu.PrefetchScalarGridSpec(
            num_scalar_prefetch=0,
            grid=(nb, ns),
            in_specs=[
                pl.BlockSpec((tb, ts, D), lambda b, s: (b, s, 0)),
                pl.BlockSpec((8, D), lambda b, s: (0, 0)),
            ],
            out_specs=pl.BlockSpec((tb, D), lambda b, s: (b, 0)),
            scratch_shapes=[
                pltpu.VMEM((tb, 1, 1), jnp.float32),   # running max m
                pltpu.VMEM((tb, 1, 1), jnp.float32),   # running denom l
                pltpu.VMEM((tb, 1, D), jnp.float32),   # weighted-sum accumulator
            ],
        ),
        compiler_params=pltpu.CompilerParams(
            dimension_semantics=("parallel", "arbitrary"),
            vmem_limit_bytes=vmem_limit,
        ),
        cost_estimate=cost,
    )(context, params)


def aggregate_layer_ref(context, w_fc, gamma, beta):
    """Pure-JAX reference implementing the PyTorch forward (eval mode)."""
    x = context.astype(jnp.float32)
    mean = jnp.mean(x, axis=-1, keepdims=True)
    var = jnp.mean((x - mean) ** 2, axis=-1, keepdims=True)
    y = (x - mean) / jnp.sqrt(var + LN_EPS) * gamma + beta
    scores = jnp.einsum("bsd,d->bs", y, w_fc)[..., None]      # (B, S, 1)
    attn = jax.nn.softmax(scores, axis=1)                     # softmax over seq
    out = jnp.einsum("bsd,bsk->bdk", x, attn)[..., 0]         # (B, D)
    return out.astype(context.dtype)


if __name__ == "__main__":
    key = jax.random.PRNGKey(0)
    B, S, D = 2, 8, 32
    k_x, k_w, k_g, k_b, k_x2 = jax.random.split(key, 5)

    context = jax.random.normal(k_x, (B, S, D), dtype=jnp.float32)
    # LayerNorm(d_model) gamma/beta and Linear(d_model, 1, bias=False) weight (D,).
    bound = 1.0 / (D ** 0.5)
    w_fc = jax.random.uniform(k_w, (D,), minval=-bound, maxval=bound,
                              dtype=jnp.float32)
    gamma = 1.0 + 0.1 * jax.random.normal(k_g, (D,), dtype=jnp.float32)
    beta = 0.1 * jax.random.normal(k_b, (D,), dtype=jnp.float32)

    out = jax.block_until_ready(aggregate_layer(context, w_fc, gamma, beta))
    ref = aggregate_layer_ref(context, w_fc, gamma, beta)
    assert out.shape == (B, D), out.shape
    assert jnp.allclose(out, ref, atol=1e-3, rtol=1e-3), (
        float(jnp.max(jnp.abs(out - ref))))

    # Ragged batch (no pad-copy): B not a multiple of the batch tile, multi-block grid.
    B2 = 13
    context2 = jax.random.normal(k_x2, (B2, S, D), dtype=jnp.float32)
    out2 = jax.block_until_ready(aggregate_layer(context2, w_fc, gamma, beta))
    ref2 = aggregate_layer_ref(context2, w_fc, gamma, beta)
    assert out2.shape == (B2, D), out2.shape
    assert jnp.allclose(out2, ref2, atol=1e-3, rtol=1e-3), (
        float(jnp.max(jnp.abs(out2 - ref2))))

    print("KERNEL_OK")
</pallas_src>

<mosaic_0001>
module attributes {stable_mosaic.version = 11 : i64} {
  func.func @_aggregate_kernel(%arg0: i32, %arg1: i32, %arg2: memref<2x8x32xf32, #tpu.memory_space<vmem>>, %arg3: memref<8x32xf32, #tpu.memory_space<vmem>>, %arg4: memref<2x32xf32, #tpu.memory_space<vmem>>, %arg5: memref<2x1x1xf32, #tpu.memory_space<vmem>>, %arg6: memref<2x1x1xf32, #tpu.memory_space<vmem>>, %arg7: memref<2x1x32xf32, #tpu.memory_space<vmem>>) attributes {dimension_semantics = [#tpu.dimension_semantics<parallel>, #tpu.dimension_semantics<arbitrary>], iteration_bounds = array<i64: 1, 1>, scalar_prefetch = 0 : i64, scratch_operands = 3 : i64, tpu.core_type = #tpu.core_type<tc>, window_params = [{transform_indices = @transform_0, window_bounds = array<i64: 2, 8, 32>}, {pipeline_mode = #tpu.pipeline_mode<synchronous>, transform_indices = @transform_1, window_bounds = array<i64: 8, 32>}, {transform_indices = @transform_2, window_bounds = array<i64: 2, 32>}]} {
    %c0_i32 = arith.constant 0 : i32
    %0 = arith.cmpi eq, %arg1, %c0_i32 : i32
    %1 = arith.extui %0 : i1 to i32
    %c0_i32_0 = arith.constant 0 : i32
    %2 = arith.cmpi ne, %1, %c0_i32_0 : i32
    scf.if %2 {
      %cst_38 = arith.constant 0xFF800000 : f32
      %68 = vector.broadcast %cst_38 : f32 to vector<2x1x1xf32>
      %c0_39 = arith.constant 0 : index
      %c0_40 = arith.constant 0 : index
      %c0_41 = arith.constant 0 : index
      %69 = vector.load %arg5[%c0_39, %c0_40, %c0_41] : memref<2x1x1xf32, #tpu.memory_space<vmem>>, vector<2x1x1xf32>
      tpu.vector_store %arg5[%c0_39, %c0_40, %c0_41], %68 {strides = array<i32>} : memref<2x1x1xf32, #tpu.memory_space<vmem>>, vector<2x1x1xf32>,
      %cst_42 = arith.constant 0.000000e+00 : f32
      %70 = vector.broadcast %cst_42 : f32 to vector<2x1x1xf32>
      %c0_43 = arith.constant 0 : index
      %c0_44 = arith.constant 0 : index
      %c0_45 = arith.constant 0 : index
      %71 = vector.load %arg6[%c0_43, %c0_44, %c0_45] : memref<2x1x1xf32, #tpu.memory_space<vmem>>, vector<2x1x1xf32>
      tpu.vector_store %arg6[%c0_43, %c0_44, %c0_45], %70 {strides = array<i32>} : memref<2x1x1xf32, #tpu.memory_space<vmem>>, vector<2x1x1xf32>,
      %cst_46 = arith.constant 0.000000e+00 : f32
      %72 = vector.broadcast %cst_46 : f32 to vector<2x1x32xf32>
      %c0_47 = arith.constant 0 : index
      %c0_48 = arith.constant 0 : index
      %c0_49 = arith.constant 0 : index
      %73 = vector.load %arg7[%c0_47, %c0_48, %c0_49] : memref<2x1x32xf32, #tpu.memory_space<vmem>>, vector<2x1x32xf32>
      tpu.vector_store %arg7[%c0_47, %c0_48, %c0_49], %72 {strides = array<i32>} : memref<2x1x32xf32, #tpu.memory_space<vmem>>, vector<2x1x32xf32>,
    } else {
    }
    %c0 = arith.constant 0 : index
    %c0_1 = arith.constant 0 : index
    %3 = vector.load %arg3[%c0, %c0_1] : memref<8x32xf32, #tpu.memory_space<vmem>>, vector<8x32xf32>
    %4 = vector.extract_strided_slice %3 {offsets = [0, 0], sizes = [1, 32], strides = [1, 1]} : vector<8x32xf32> to vector<1x32xf32>
    %5 = vector.shape_cast %4 : vector<1x32xf32> to vector<1x1x32xf32>
    %6 = vector.extract_strided_slice %3 {offsets = [0, 0], sizes = [1, 32], strides = [1, 1]} : vector<8x32xf32> to vector<1x32xf32>
    %cst = arith.constant dense<0.000000e+00> : vector<1xf32>
    %7 = vector.multi_reduction <add>, %6, %cst [1] : vector<1x32xf32> to vector<1xf32>
    %8 = vector.shape_cast %7 : vector<1xf32> to vector<1x1xf32>
    %9 = vector.shape_cast %8 : vector<1x1xf32> to vector<1x1x1xf32>
    %10 = vector.extract_strided_slice %3 {offsets = [1, 0], sizes = [1, 32], strides = [1, 1]} : vector<8x32xf32> to vector<1x32xf32>
    %cst_2 = arith.constant dense<0.000000e+00> : vector<1xf32>
    %11 = vector.multi_reduction <add>, %10, %cst_2 [1] : vector<1x32xf32> to vector<1xf32>
    %12 = vector.shape_cast %11 : vector<1xf32> to vector<1x1xf32>
    %13 = vector.shape_cast %12 : vector<1x1xf32> to vector<1x1x1xf32>
    %c0_3 = arith.constant 0 : index
    %c0_4 = arith.constant 0 : index
    %c0_5 = arith.constant 0 : index
    %14 = vector.load %arg2[%c0_3, %c0_4, %c0_5] : memref<2x8x32xf32, #tpu.memory_space<vmem>>, vector<2x8x32xf32>
    %cst_6 = arith.constant dense<0.000000e+00> : vector<2x8xf32>
    %15 = vector.multi_reduction <add>, %14, %cst_6 [2] : vector<2x8x32xf32> to vector<2x8xf32>
    %16 = vector.shape_cast %15 : vector<2x8xf32> to vector<2x8x1xf32>
    %17 = arith.mulf %14, %14 : vector<2x8x32xf32>
    %cst_7 = arith.constant dense<0.000000e+00> : vector<2x8xf32>
    %18 = vector.multi_reduction <add>, %17, %cst_7 [2] : vector<2x8x32xf32> to vector<2x8xf32>
    %19 = vector.shape_cast %18 : vector<2x8xf32> to vector<2x8x1xf32>
    %20 = vector.broadcast %5 : vector<1x1x32xf32> to vector<2x8x32xf32>
    %21 = arith.mulf %14, %20 : vector<2x8x32xf32>
    %cst_8 = arith.constant dense<0.000000e+00> : vector<2x8xf32>
    %22 = vector.multi_reduction <add>, %21, %cst_8 [2] : vector<2x8x32xf32> to vector<2x8xf32>
    %23 = vector.shape_cast %22 : vector<2x8xf32> to vector<2x8x1xf32>
    %cst_9 = arith.constant 3.125000e-02 : f32
    %24 = vector.broadcast %cst_9 : f32 to vector<2x8x1xf32>
    %25 = arith.mulf %16, %24 : vector<2x8x1xf32>
    %cst_10 = arith.constant 3.125000e-02 : f32
    %26 = vector.broadcast %cst_10 : f32 to vector<2x8x1xf32>
    %27 = arith.mulf %19, %26 : vector<2x8x1xf32>
    %28 = arith.mulf %25, %25 : vector<2x8x1xf32>
    %29 = arith.subf %27, %28 : vector<2x8x1xf32>
    %30 = vector.broadcast %9 : vector<1x1x1xf32> to vector<2x8x1xf32>
    %31 = arith.mulf %25, %30 : vector<2x8x1xf32>
    %32 = arith.subf %23, %31 : vector<2x8x1xf32>
    %cst_11 = arith.constant 9.99999974E-6 : f32
    %33 = vector.broadcast %cst_11 : f32 to vector<2x8x1xf32>
    %34 = arith.addf %29, %33 : vector<2x8x1xf32>
    %35 = math.rsqrt %34 : vector<2x8x1xf32>
    %36 = arith.mulf %32, %35 : vector<2x8x1xf32>
    %37 = vector.broadcast %13 : vector<1x1x1xf32> to vector<2x8x1xf32>
    %38 = arith.addf %36, %37 : vector<2x8x1xf32>
    %c0_12 = arith.constant 0 : index
    %c0_13 = arith.constant 0 : index
    %c0_14 = arith.constant 0 : index
    %39 = vector.load %arg5[%c0_12, %c0_13, %c0_14] : memref<2x1x1xf32, #tpu.memory_space<vmem>>, vector<2x1x1xf32>
    %cst_15 = arith.constant dense<0xFF800000> : vector<2x1xf32>
    %40 = vector.multi_reduction <maximumf>, %38, %cst_15 [1] : vector<2x8x1xf32> to vector<2x1xf32>
    %41 = vector.shape_cast %40 : vector<2x1xf32> to vector<2x1x1xf32>
    %42 = arith.maximumf %39, %41 : vector<2x1x1xf32>
    %43 = arith.subf %39, %42 : vector<2x1x1xf32>
    %44 = math.exp %43 : vector<2x1x1xf32>
    %45 = vector.broadcast %42 : vector<2x1x1xf32> to vector<2x8x1xf32>
    %46 = arith.subf %38, %45 : vector<2x8x1xf32>
    %47 = math.exp %46 : vector<2x8x1xf32>
    %c0_16 = arith.constant 0 : index
    %c0_17 = arith.constant 0 : index
    %c0_18 = arith.constant 0 : index
    %48 = vector.load %arg6[%c0_16, %c0_17, %c0_18] : memref<2x1x1xf32, #tpu.memory_space<vmem>>, vector<2x1x1xf32>
    %49 = arith.mulf %44, %48 : vector<2x1x1xf32>
    %cst_19 = arith.constant dense<0.000000e+00> : vector<2x1xf32>
    %50 = vector.multi_reduction <add>, %47, %cst_19 [1] : vector<2x8x1xf32> to vector<2x1xf32>
    %51 = vector.shape_cast %50 : vector<2x1xf32> to vector<2x1x1xf32>
    %52 = arith.addf %49, %51 : vector<2x1x1xf32>
    %c0_20 = arith.constant 0 : index
    %c0_21 = arith.constant 0 : index
    %c0_22 = arith.constant 0 : index
    %53 = vector.load %arg6[%c0_20, %c0_21, %c0_22] : memref<2x1x1xf32, #tpu.memory_space<vmem>>, vector<2x1x1xf32>
    tpu.vector_store %arg6[%c0_20, %c0_21, %c0_22], %52 {strides = array<i32>} : memref<2x1x1xf32, #tpu.memory_space<vmem>>, vector<2x1x1xf32>,
    %c0_23 = arith.constant 0 : index
    %c0_24 = arith.constant 0 : index
    %c0_25 = arith.constant 0 : index
    %54 = vector.load %arg2[%c0_23, %c0_24, %c0_25] : memref<2x8x32xf32, #tpu.memory_space<vmem>>, vector<2x8x32xf32>
    %c0_26 = arith.constant 0 : index
    %c0_27 = arith.constant 0 : index
    %c0_28 = arith.constant 0 : index
    %55 = vector.load %arg7[%c0_26, %c0_27, %c0_28] : memref<2x1x32xf32, #tpu.memory_space<vmem>>, vector<2x1x32xf32>
    %56 = vector.broadcast %44 : vector<2x1x1xf32> to vector<2x1x32xf32>
    %57 = arith.mulf %56, %55 : vector<2x1x32xf32>
    %58 = vector.broadcast %47 : vector<2x8x1xf32> to vector<2x8x32xf32>
    %59 = arith.mulf %58, %54 : vector<2x8x32xf32>
    %cst_29 = arith.constant dense<0.000000e+00> : vector<2x32xf32>
    %60 = vector.multi_reduction <add>, %59, %cst_29 [1] : vector<2x8x32xf32> to vector<2x32xf32>
    %61 = vector.shape_cast %60 : vector<2x32xf32> to vector<2x1x32xf32>
    %62 = arith.addf %57, %61 : vector<2x1x32xf32>
    %c0_30 = arith.constant 0 : index
    %c0_31 = arith.constant 0 : index
    %c0_32 = arith.constant 0 : index
    %63 = vector.load %arg7[%c0_30, %c0_31, %c0_32] : memref<2x1x32xf32, #tpu.memory_space<vmem>>, vector<2x1x32xf32>
    tpu.vector_store %arg7[%c0_30, %c0_31, %c0_32], %62 {strides = array<i32>} : memref<2x1x32xf32, #tpu.memory_space<vmem>>, vector<2x1x32xf32>,
    %c0_33 = arith.constant 0 : index
    %c0_34 = arith.constant 0 : index
    %c0_35 = arith.constant 0 : index
    %64 = vector.load %arg5[%c0_33, %c0_34, %c0_35] : memref<2x1x1xf32, #tpu.memory_space<vmem>>, vector<2x1x1xf32>
    tpu.vector_store %arg5[%c0_33, %c0_34, %c0_35], %42 {strides = array<i32>} : memref<2x1x1xf32, #tpu.memory_space<vmem>>, vector<2x1x1xf32>,
    %c0_i32_36 = arith.constant 0 : i32
    %65 = arith.cmpi eq, %arg1, %c0_i32_36 : i32
    %66 = arith.extui %65 : i1 to i32
    %c0_i32_37 = arith.constant 0 : i32
    %67 = arith.cmpi ne, %66, %c0_i32_37 : i32
    scf.if %67 {
      %c0_38 = arith.constant 0 : index
      %c0_39 = arith.constant 0 : index
      %c0_40 = arith.constant 0 : index
      %68 = vector.load %arg6[%c0_38, %c0_39, %c0_40] : memref<2x1x1xf32, #tpu.memory_space<vmem>>, vector<2x1x1xf32>
      %cst_41 = arith.constant 1.000000e+00 : f32
      %69 = vector.broadcast %cst_41 : f32 to vector<2x1x1xf32>
      %70 = arith.divf %69, %68 : vector<2x1x1xf32>
      %c0_42 = arith.constant 0 : index
      %c0_43 = arith.constant 0 : index
      %c0_44 = arith.constant 0 : index
      %71 = vector.load %arg7[%c0_42, %c0_43, %c0_44] : memref<2x1x32xf32, #tpu.memory_space<vmem>>, vector<2x1x32xf32>
      %72 = vector.broadcast %70 : vector<2x1x1xf32> to vector<2x1x32xf32>
      %73 = arith.mulf %71, %72 : vector<2x1x32xf32>
      %74 = vector.shape_cast %73 : vector<2x1x32xf32> to vector<2x32xf32>
      %c0_45 = arith.constant 0 : index
      %c0_46 = arith.constant 0 : index
      %75 = vector.load %arg4[%c0_45, %c0_46] : memref<2x32xf32, #tpu.memory_space<vmem>>, vector<2x32xf32>
      tpu.vector_store %arg4[%c0_45, %c0_46], %74 {strides = array<i32>} : memref<2x32xf32, #tpu.memory_space<vmem>>, vector<2x32xf32>,
    } else {
    }
    return
  }
  func.func @transform_0(%arg0: i32, %arg1: i32) -> (i32, i32, i32) {
    %c0_i32 = arith.constant 0 : i32
    %c0_i32_0 = arith.constant 0 : i32
    return %arg0, %arg1, %c0_i32 : i32, i32, i32
  }
  func.func @transform_1(%arg0: i32, %arg1: i32) -> (i32, i32) {
    %c0_i32 = arith.constant 0 : i32
    %c0_i32_0 = arith.constant 0 : i32
    %c0_i32_1 = arith.constant 0 : i32
    return %c0_i32, %c0_i32_0 : i32, i32
  }
  func.func @transform_2(%arg0: i32, %arg1: i32) -> (i32, i32) {
    %c0_i32 = arith.constant 0 : i32
    %c0_i32_0 = arith.constant 0 : i32
    return %arg0, %c0_i32 : i32, i32
  }
}

</mosaic_0001>

<bundles_post_ra>
// kernel: tpu_custom_call.1
= control target key start
LH: loop header
LB: loop body
LE: loop exit
PB: predicated region body
PF: predicated region fallthrough
CT: control target
= control target key end

     0   :  { %7 = vsyncpa [#allocation6], 0  ;;  %s512_s0 = inlined_call_operand.hbm [shape: f32[2,8,32], index: 0, kind: input, shape index: {}]   ;;  %s513_s1 = inlined_call_operand.hbm [shape: f32[8,32], index: 1, kind: input, shape index: {}]   ;;  %s514_s2 = inlined_call_operand.hbm [shape: f32[2,32], index: 2, kind: output, shape index: {}]  }
   0x1   :  { %8 = vsyncpa [#allocation9], 0 }
   0x2   :  { %9 = vsyncpa [#allocation7], 0  ;;  %s402_s9 = smov [#allocation5]   ;;  %s330_s13 = scalar_lea.hbm %s512_s0, 256 }
   0x3   :  { %s15_s10 = sshll.u32 %s402_s9, 4  ;;  %p331_p0 = scmp.ne.s32.totalorder %s512_s0, %s330_s13  ;;  %s16_s10 = int_to_ptr.vmem [resolvable:$true] %s15_s10 }
   0x4   :  { %p334_p1 = scmp.lt.u32.totalorder %s330_s13, %s512_s0 }
   0x6   :  { %p336_p2 = pnand %p334_p1, %p331_p0 }
   0x8   :  { %339 = shalt.err (!%p336_p2)
}
   0x9   :  { %s340_s18 = scalar_lea.vmem %s16_s10, 256  ;;  %p345_p4 = scmp.lt.s32.totalorder %s16_s10, %s16_s10 }
   0xa   :  { %p341_p3 = scmp.ne.s32.totalorder %s16_s10, %s340_s18  ;;  %p346_p5 = scmp.lt.s32.totalorder %s340_s18, %s340_s18 }
   0xc   :  { %p347_p6 = por %p346_p5, %p345_p4 }
   0xe   :  { %p348_p7 = pnand %p347_p6, %p341_p3 }
  0x10   :  { %351 = shalt.err (!%p348_p7)
}
  0x11   :  { %s403_s19 = smov 128   ;;  %s404_s20 = smov 8  }
  0x12   :  { %21 = dma.hbm_to_vmem [thread:$0]  %s512_s0, 256, %s16_s10, [#allocation6], %s403_s19, %s403_s19, %s404_s20  }
  0x13   :  { %s405_s23 = smov [#allocation8]   ;;  %s352_s27 = scalar_lea.hbm %s513_s1, 128 }
  0x14   :  { %s28_s24 = sshll.u32 %s405_s23, 4  ;;  %p353_p8 = scmp.ne.s32.totalorder %s513_s1, %s352_s27  ;;  %s29_s24 = int_to_ptr.vmem [resolvable:$true] %s28_s24 }
  0x15   :  { %p356_p9 = scmp.lt.u32.totalorder %s352_s27, %s513_s1 }
  0x17   :  { %p358_p10 = pnand %p356_p9, %p353_p8 }
  0x19   :  { %361 = shalt.err (!%p358_p10)
}
  0x1a   :  { %s362_s4 = scalar_lea.vmem %s29_s24, 128  ;;  %p367_p12 = scmp.lt.s32.totalorder %s29_s24, %s29_s24 }
  0x1b   :  { %p363_p11 = scmp.ne.s32.totalorder %s29_s24, %s362_s4  ;;  %p368_p13 = scmp.lt.s32.totalorder %s362_s4, %s362_s4 }
  0x1d   :  { %p369_p0 = por %p368_p13, %p367_p12 }
  0x1f   :  { %p370_p1 = pnand %p369_p0, %p363_p11 }
  0x21   :  { %373 = shalt.err (!%p370_p1)
}
  0x22   :  { %31 = dma.hbm_to_vmem [thread:$0]  %s513_s1, 128, %s29_s24, [#allocation9]  }
  0x23   :  { %396 = dma.done.wait [#allocation6], 256  }
  0x24   :  { %397 = vsyncadd [#allocation6], 4294967040 }
  0x25   :  { %398 = dma.done.wait [#allocation9], 128  }
  0x26   :  { %399 = vsyncadd [#allocation9], 4294967168  ;;  %vm42_vm0 = vcmask 0   ;;  %vm47_vm1 = vcmask 253952   ;;  %v406_v0 = vmov 0.0   ;;  %v76_v1 = vlaneseq  ;;  %v459_v4 = vld [vmem:[#allocation5] sm:$0xff] }
  0x27   :  { %45 = vst.msk [vmem:[#allocation3] sm:$0x1] %vm42_vm0, %v406_v0  ;;  %46 = vst.msk [vmem:[#allocation3 + $0x1] sm:$0x1] %vm42_vm0, %v406_v0  ;;  %vm61_vm2 = vcmask 261120   ;;  %v461_v5 = vld [vmem:[#allocation5 + $0x8] sm:$0xff]  ;;  %v68_v8 = vmul.f32 %v459_v4, %v459_v4 }
  0x28   :  { %48 = vst.msk [vmem:[#allocation4] sm:$0x1] %vm47_vm1, %v406_v0  ;;  %49 = vst.msk [vmem:[#allocation4 + $0x1] sm:$0x1] %vm47_vm1, %v406_v0  ;;  %v454_v2 = vshrl.u32 %v76_v1, 7  ;;  %v50_v6 = vld [vmem:[#allocation8] sm:$0xff]  ;;  %v69_v9 = vmul.f32 %v461_v5, %v461_v5 }
  0x29   :  { %v62_v7 = vsel %vm61_vm2, %v459_v4, 0.0  ;;  %v70_v11 = vsel %vm61_vm2, %v68_v8, 0.0  ;;  %v65_v12 = vsel %vm61_vm2, %v461_v5, 0.0  ;;  %v52_v15 = vsel %vm47_vm1, %v50_v6, 0.0  ;;  %s410_s1 = smov [#allocation10]  }
  0x2a   :  { %v457_v3 = vsub.s32 0, %v454_v2  ;;  %63 = vadd.xlane.f32.xlu0 %v62_v7  ;;  %71 = vadd.xlane.f32.xlu1 %v70_v11  ;;  %v73_v13 = vsel %vm61_vm2, %v69_v9, 0.0  ;;  %vm55_vm3 = vcmask 254977   ;;  %v407_v20 = vmov -inf   ;;  %s293_s6 = sshll.u32 %s410_s1, 4  ;;  %s294_s6 = int_to_ptr.vmem [resolvable:$true] %s293_s6 }
  0x2b   :  { %v56_v19 = vsel %vm55_vm3, %v50_v6, 0.0  ;;  %43 = vst.msk [vmem:[#allocation2] sm:$0x1] %vm42_vm0, %v407_v20  ;;  %44 = vst.msk [vmem:[#allocation2 + $0x1] sm:$0x1] %vm42_vm0, %v407_v20  ;;  %v408_v21 = vmov 0   ;;  %p379_p3 = scmp.lt.s32.totalorder %s294_s6, %s294_s6 }
  0x2c   :  { %v79_v10 = vrot.slane %v50_v6, %v457_v3  ;;  %312 = vset.pattern.permute.xlu0 %v408_v21  ;;  %313 = vset.pattern.permute.xlu1 %v408_v21  ;;  %v112_v40 = vsub.s32 1, %v454_v2  ;;  %vm160_vm4 = vcmask 7168   ;;  %vm285_vm5 = vcmask 254976   ;;  %s374_s7 = scalar_lea.vmem %s294_s6, 32 }
  0x2d   :  { %p375_p2 = scmp.ne.s32.totalorder %s294_s6, %s374_s7  ;;  %p380_p4 = scmp.lt.s32.totalorder %s374_s7, %s374_s7 }
  0x2e   :  { %v80_v14 = vmul.f32 %v79_v10, %v459_v4  ;;  %66 = vadd.xlane.f32.xlu0 %v65_v12  ;;  %v81_v16 = vmul.f32 %v79_v10, %v461_v5  ;;  %74 = vadd.xlane.f32.xlu1 %v73_v13 }
  0x2f   :  { %p381_p5 = por %p380_p4, %p379_p3 }
  0x30   :  { %v82_v17 = vsel %vm61_vm2, %v80_v14, 0.0  ;;  %v85_v18 = vsel %vm61_vm2, %v81_v16, 0.0 }
  0x31   :  { %p382_p6 = pnand %p381_p5, %p375_p2 }
  0x32   :  { %53 = vadd.xlane.f32.xlu0 %v52_v15  ;;  %83 = vadd.xlane.f32.xlu1 %v82_v17  ;;  %v116_v61 = vld [vmem:[#allocation2] sm:$0x1]  ;;  %v117_v6 = vld [vmem:[#allocation2 + $0x1] sm:$0x1] }
  0x36   :  { %86 = vadd.xlane.f32.xlu0 %v85_v18  ;;  %57 = vadd.xlane.f32.xlu1 %v56_v19 }
  0xb7   :  { %v64_v22 = vpop.xlane.xlu0 %63  ;;  %v72_v24 = vpop.xlane.xlu1 %71 }
  0xb8   :  { %v88_v23 = vmul.f32 0.03125, %v64_v22  ;;  %v90_v26 = vmul.f32 0.03125, %v72_v24 }
  0xba   :  { %v92_v25 = vmul.f32 %v88_v23, %v88_v23 }
  0xbb   :  { %v67_v27 = vpop.xlane.xlu0 %66  ;;  %v75_v30 = vpop.xlane.xlu1 %74 }
  0xbc   :  { %v94_v28 = vsub.f32 %v90_v26, %v92_v25  ;;  %v89_v29 = vmul.f32 0.03125, %v67_v27  ;;  %v91_v33 = vmul.f32 0.03125, %v75_v30  ;;  %v156_v30 = vld [vmem:[#allocation3] sm:$0x1] }
  0xbe   :  { %v104_v31 = vadd.f32 1e-05, %v94_v28  ;;  %v93_v32 = vmul.f32 %v89_v29, %v89_v29 }
  0xbf   :  { %v54_v34 = vpop.xlane.xlu0 %53  ;;  %v84_v38 = vpop.xlane.xlu1 %83 }
  0xc0   :  { %314 = vrsqrt.f32 %v104_v31  ;;  %v95_v35 = vsub.f32 %v91_v33, %v93_v32  ;;  %v99_v36 = vrot.slane %v54_v34, %v457_v3 }
  0xc2   :  { %v105_v37 = vadd.f32 1e-05, %v95_v35  ;;  %v100_v39 = vmul.f32 %v99_v36, %v88_v23  ;;  %v101_v43 = vmul.f32 %v99_v36, %v89_v29 }
  0xc3   :  { %v58_v41 = vpop.xlane.xlu1 %57  ;;  %v87_v46 = vpop.xlane.xlu0 %86 }
  0xc4   :  { %316 = vrsqrt.f32 %v105_v37  ;;  %v102_v42 = vsub.f32 %v84_v38, %v100_v39  ;;  %v113_v44 = vrot.slane %v58_v41, %v112_v40  ;;  %v103_v48 = vsub.f32 %v87_v46, %v101_v43  ;;  %v157_v37 = vld [vmem:[#allocation3 + $0x1] sm:$0x1] }
  0xca   :  { %v315_v45 = vpop.eup %314 }
  0xcb   :  { %v108_v47 = vmul.f32 %v315_v45, %v102_v42 }
  0xcd   :  { %v114_v49 = vadd.f32 %v113_v44, %v108_v47 }
  0xce   :  { %v317_v50 = vpop.eup %316 }
  0xcf   :  { %v109_v51 = vmul.f32 %v317_v50, %v103_v48  ;;  %v118_v52 = vrot.slane %v114_v49, 4 }
  0xd1   :  { %v115_v53 = vadd.f32 %v113_v44, %v109_v51  ;;  %v119_v54 = vmax.f32 %v114_v49, %v118_v52 }
  0xd3   :  { %v120_v55 = vrot.slane %v119_v54, 2  ;;  %v124_v56 = vrot.slane %v115_v53, 4 }
  0xd5   :  { %v121_v57 = vmax.f32 %v119_v54, %v120_v55  ;;  %v125_v58 = vmax.f32 %v115_v53, %v124_v56 }
  0xd7   :  { %v122_v59 = vrot.slane %v121_v57, 1  ;;  %v126_v60 = vrot.slane %v125_v58, 2 }
  0xd9   :  { %v123_v62 = vmax.f32 %v121_v57, %v122_v59  ;;  %v127_v63 = vmax.f32 %v125_v58, %v126_v60 }
  0xdb   :  { %v128_v0 = vrot.slane %v127_v63, 1  ;;  %v130_v1 = vmax.f32 %v116_v61, %v123_v62 }
  0xdd   :  { %v129_v7 = vmax.f32 %v127_v63, %v128_v0  ;;  %v143_v8 = vrot.slane %v130_v1, %v457_v3  ;;  %234 = vst.msk [vmem:[#allocation2] sm:$0x1] %vm42_vm0, %v130_v1  ;;  %v132_v13 = vsub.f32 %v116_v61, %v130_v1  ;;  %v182_v61 = vld [vmem:[#allocation4] sm:$0x1] }
  0xdf   :  { %v131_v9 = vmax.f32 %v117_v6, %v129_v7  ;;  %v150_v10 = vsub.f32 %v114_v49, %v143_v8  ;;  %v134_v17 = vmul.f32 1.442695, %v132_v13  ;;  %v409_v13 = vmov 1966171168  }
  0xe1   :  { %v147_v11 = vrot.slane %v131_v9, %v457_v3  ;;  %v152_v12 = vmul.f32 1.442695, %v150_v10  ;;  %235 = vst.msk [vmem:[#allocation2 + $0x1] sm:$0x1] %vm42_vm0, %v131_v9  ;;  %v133_v16 = vsub.f32 %v117_v6, %v131_v9 }
  0xe3   :  { %v151_v14 = vsub.f32 %v115_v53, %v147_v11  ;;  %318 = vpow2.f32 %v152_v12  ;;  %v136_v18 = vmul.f32 1.442695, %v133_v16 }
  0xe5   :  { %v154_v15 = vmul.f32 1.442695, %v151_v14  ;;  %v271_v14 = vunpack.c.l.s4 %v409_v13 }
  0xe7   :  { %320 = vpow2.f32 %v154_v15 }
  0xe8   :  { %322 = vpow2.f32 %v134_v17  ;;  %v272_v17 = vunpack.c.0.s8 %v271_v14 }
  0xe9   :  { %324 = vpow2.f32 %v136_v18 }
  0xed   :  { %v319_v19 = vpop.eup %318 }
  0xee   :  { %v161_v20 = vsel %vm160_vm4, %v319_v19, 0.0  ;;  %206 = vperm.xlu0 %312, %v319_v19  }
  0xef   :  { %v162_v21 = vrot.slane %v161_v20, 4 }
  0xf1   :  { %v321_v22 = vpop.eup %320  ;;  %v163_v23 = vadd.f32 %v162_v21, %v161_v20 }
  0xf2   :  { %v168_v24 = vsel %vm160_vm4, %v321_v22, 0.0  ;;  %211 = vperm.xlu1 %313, %v321_v22   ;;  %v323_v27 = vpop.eup %322 }
  0xf3   :  { %v164_v25 = vrot.slane %v163_v23, 2  ;;  %v169_v26 = vrot.slane %v168_v24, 4  ;;  %v325_v33 = vpop.eup %324  ;;  %v158_v34 = vmul.f32 %v323_v27, %v156_v30 }
  0xf4   :  { %v159_v40 = vmul.f32 %v325_v33, %v157_v37 }
  0xf5   :  { %v165_v28 = vadd.f32 %v164_v25, %v163_v23  ;;  %v170_v29 = vadd.f32 %v169_v26, %v168_v24  ;;  %v275_v23 = vsub.s32 %v272_v17, %v454_v2 }
  0xf6   :  { %186 = vperm.xlu1 %313, %v323_v27  }
  0xf7   :  { %v166_v31 = vrot.slane %v165_v28, 1  ;;  %v171_v32 = vrot.slane %v170_v29, 2 }
  0xf9   :  { %v167_v35 = vadd.f32 %v166_v31, %v165_v28  ;;  %v172_v36 = vadd.f32 %v171_v32, %v170_v29 }
  0xfa   :  { %195 = vperm.xlu1 %313, %v325_v33  }
  0xfb   :  { %v173_v38 = vrot.slane %v172_v36, 1  ;;  %v175_v39 = vadd.f32 %v167_v35, %v158_v34 }
  0xfd   :  { %v174_v41 = vadd.f32 %v173_v38, %v172_v36  ;;  %178 = vst.msk [vmem:[#allocation3] sm:$0x1] %vm42_vm0, %v175_v39 }
  0xff   :  { %v176_v42 = vadd.f32 %v174_v41, %v159_v40 }
 0x101   :  { %179 = vst.msk [vmem:[#allocation3 + $0x1] sm:$0x1] %vm42_vm0, %v176_v42 }
 0x104   :  { %v239_v43 = vld [vmem:[#allocation3] sm:$0x1] }
 0x105   :  { %326 = vrcp.f32 %v239_v43 }
 0x108   :  { %v240_v44 = vld [vmem:[#allocation3 + $0x1] sm:$0x1] }
 0x109   :  { %328 = vrcp.f32 %v240_v44 }
 0x10f   :  { %v327_v45 = vpop.eup %326 }
 0x110   :  { %249 = vperm.xlu1 %313, %v327_v45  }
 0x113   :  { %v329_v46 = vpop.eup %328 }
 0x114   :  { %258 = vperm.xlu1 %313, %v329_v46  }
 0x16d   :  { %v207_v47 = vpop.permute.xlu0 %206 }
 0x16e   :  { %v214_v48 = vmul.f32 %v207_v47, %v459_v4 }
 0x170   :  { %v216_v49 = vsel %vm61_vm2, %v214_v48, 0.0 }
 0x171   :  { %v217_v50 = vrot.slane %v216_v49, 4  ;;  %v212_v51 = vpop.permute.xlu1 %211 }
 0x172   :  { %v215_v52 = vmul.f32 %v212_v51, %v461_v5  ;;  %v183_v5 = vld [vmem:[#allocation4 + $0x1] sm:$0x1] }
 0x173   :  { %v218_v53 = vadd.f32 %v217_v50, %v216_v49 }
 0x174   :  { %v223_v54 = vsel %vm61_vm2, %v215_v52, 0.0 }
 0x175   :  { %v219_v55 = vrot.slane %v218_v53, 2  ;;  %v224_v56 = vrot.slane %v223_v54, 4  ;;  %v187_v57 = vpop.permute.xlu1 %186 }
 0x176   :  { %v192_v60 = vrot.slane %v187_v57, %v457_v3 }
 0x177   :  { %v220_v58 = vadd.f32 %v219_v55, %v218_v53  ;;  %v225_v59 = vadd.f32 %v224_v56, %v223_v54 }
 0x178   :  { %v202_v6 = vmul.f32 %v192_v60, %v182_v61 }
 0x179   :  { %v221_v62 = vrot.slane %v220_v58, 1  ;;  %v226_v63 = vrot.slane %v225_v59, 2  ;;  %v196_v4 = vpop.permute.xlu1 %195 }
 0x17a   :  { %v201_v7 = vrot.slane %v196_v4, %v457_v3 }
 0x17b   :  { %v227_v0 = vadd.f32 %v226_v63, %v225_v59  ;;  %v222_v1 = vadd.f32 %v221_v62, %v220_v58 }
 0x17c   :  { %v203_v11 = vmul.f32 %v201_v7, %v183_v5 }
 0x17d   :  { %v228_v8 = vrot.slane %v227_v0, 1  ;;  %v230_v9 = vadd.f32 %v222_v1, %v202_v6 }
 0x17f   :  { %232 = vst.msk [vmem:[#allocation4] sm:$0x1] %vm47_vm1, %v230_v9  ;;  %v229_v10 = vadd.f32 %v228_v8, %v227_v0 }
 0x181   :  { %v231_v12 = vadd.f32 %v229_v10, %v203_v11 }
 0x183   :  { %233 = vst.msk [vmem:[#allocation4 + $0x1] sm:$0x1] %vm47_vm1, %v231_v12 }
 0x186   :  { %v245_v20 = vld [vmem:[#allocation4] sm:$0x1] }
 0x18a   :  { %v246_v21 = vld [vmem:[#allocation4 + $0x1] sm:$0x1] }
 0x18f   :  { %v250_v15 = vpop.permute.xlu1 %249 }
 0x190   :  { %v255_v16 = vrot.slane %v250_v15, %v457_v3 }
 0x192   :  { %v265_v22 = vmul.f32 %v255_v16, %v245_v20 }
 0x193   :  { %v259_v18 = vpop.permute.xlu1 %258 }
 0x194   :  { %v264_v19 = vrot.slane %v259_v18, %v457_v3 }
 0x196   :  { %v266_v24 = vmul.f32 %v264_v19, %v246_v21 }
 0x198   :  { %v269_v25 = vcombine.low %v265_v22, %v266_v24 }
 0x19a   :  { %v276_v26 = vrot.slane %v269_v25, %v275_v23 }
 0x19c   :  { %v283_v27 = vrot.slane %v276_v26, %v275_v23 }
 0x19e   :  { %286 = vst.msk [vmem:[#allocation10] sm:$0x3] %vm285_vm5, %v283_v27 }
 0x19f   :  { %385 = shalt.err (!%p382_p6)
}
 0x1a0   :  { %s386_s10 = scalar_lea.hbm %s514_s2, 32 }
 0x1a1   :  { %p387_p7 = scmp.ne.s32.totalorder %s514_s2, %s386_s10  ;;  %p390_p8 = scmp.lt.u32.totalorder %s386_s10, %s514_s2 }
 0x1a3   :  { %p392_p9 = pnand %p390_p8, %p387_p7 }
 0x1a5   :  { %395 = shalt.err (!%p392_p9)
}
 0x1a6   :  { %296 = dma.vmem_to_hbm [thread:$0]  %s294_s6, 32, %s514_s2, [#allocation7]  }
 0x1a7   :  { %400 = dma.done.wait [#allocation7], 32  }
 0x1a8   :  { %401 = vsyncadd [#allocation7], 4294967264 }
 0x1a9   :  { %300 = vsyncpa [#allocation6], 1 }
 0x1aa   :  { %301 = vsyncpa [#allocation9], 1 }
 0x1ab   :  { %302 = vsyncpa [#allocation7], 1 }

</bundles_post_ra>
